<compile_context>
chip_gen: v7x
topology: tpu7x:2x2x1
jax: 0.10.0
libtpu: 0.0.40
codegen_flags: <defaults>
</compile_context>

<pallas_src>
import functools

import jax
import jax.numpy as jnp
from jax.experimental import pallas as pl
from jax.experimental.pallas import tpu as pltpu


# Per-batch (C, HW) slab budget for the fused single-pass path.  With double
# buffering of input + output this means ~4x resident in VMEM (+ tiny weights).
_FUSED_SLAB_BYTES = 8 << 20
# Per-tile budget for the streaming fallback passes.
_TILE_BYTES = 4 << 20
# Explicit scoped-VMEM limit: 48 MiB leaves headroom under v7x's 64 MiB
# physical per-TC VMEM and is far below v5e/v6e's 128 MiB.
_VMEM_LIMIT_BYTES = 48 << 20


def _fused_kernel(x_ref, w1_ref, w2_ref, o_ref, *, inv_hw):
    """One batch element per grid step: pool -> MLP -> sigmoid -> scale."""
    # x_ref : (1, C, HW)   o_ref : (1, C, HW)
    # w1_ref: (Cr, C)      w2_ref: (C, Cr)      (PyTorch nn.Linear layout)
    # Squeeze: global mean over HW (lane reduce), f32 accumulation.
    pooled = jnp.sum(x_ref[0], axis=-1, keepdims=True,
                     dtype=jnp.float32) * inv_hw                    # (C, 1)
    # Excitation: Linear(C->Cr, no bias) + ReLU, Linear(Cr->C, no bias).
    # Using the pooled *column* lets us apply the PyTorch weights untransposed.
    h = jnp.dot(w1_ref[...].astype(jnp.float32), pooled,
                preferred_element_type=jnp.float32)                 # (Cr, 1)
    h = jnp.maximum(h, 0.0)
    y = jnp.dot(w2_ref[...].astype(jnp.float32), h,
                preferred_element_type=jnp.float32)                 # (C, 1)
    gate = 1.0 / (1.0 + jnp.exp(-y))                                # sigmoid
    # Scale: broadcast the per-channel gate along the HW lane axis.  The gate
    # is cast to the activation dtype so no x-sized f32 temporary is created
    # (exact for f32 activations; a tiny rounding nit for bf16 inputs).
    o_ref[0] = x_ref[0] * gate.astype(o_ref.dtype)


def _pool_kernel(x_ref, p_ref, *, inv_hw):
    """Fallback pass 1: per-(batch, channel-tile) global mean over HW."""
    # x_ref: (1, tc, HW)   p_ref: (1, tc, 1)
    p_ref[...] = jnp.sum(x_ref[...], axis=-1, keepdims=True,
                         dtype=jnp.float32) * inv_hw


def _scale_kernel(x_ref, g_ref, o_ref):
    """Fallback pass 2: x * gate, streamed tile by tile in the input dtype."""
    # x_ref: (1, tc, HW)   g_ref: (1, tc, 1)   o_ref: (1, tc, HW)
    o_ref[...] = x_ref[...] * g_ref[...].astype(o_ref.dtype)


def _pick_c_tile(c, hw, itemsize, pack, max_bytes):
    """Largest channel tile tc (multiple of `pack`, dividing C) whose
    (tc, HW) block fits the byte budget; full C if everything fits."""
    if c * hw * itemsize <= max_bytes:
        return c
    best = None
    t = pack
    while t < c:
        if c % t == 0 and t * hw * itemsize <= max_bytes:
            best = t
        t += pack
    if best is not None:
        return best
    if c % pack == 0:
        return pack  # minimal sublane-aligned tile (over budget but correct)
    # TODO(synk): also tile HW (lane-axis tiles must be multiples of 128) for
    # pathological shapes; fall back to a full-C block for now.
    return c


def se_attention(x_nchw, w1, w2):
    """SEAttention forward.

    x_nchw: (B, C, H, W) activations.
    w1    : (C//r, C)  -- fc[0].weight (PyTorch nn.Linear layout, no bias).
    w2    : (C, C//r)  -- fc[2].weight.
    """
    B, C, H, W = x_nchw.shape
    HW = H * W
    Cr = w1.shape[0]
    dtype = x_nchw.dtype
    itemsize = jnp.dtype(dtype).itemsize
    pack = max(8, 32 // itemsize)     # sublane packing: 8 f32 / 16 bf16 / 32 i8

    # Native layout: a free, contiguous reshape -- no HBM transposes.
    x = x_nchw.reshape(B, C, HW)
    inv_hw = 1.0 / HW
    slab_bytes = C * HW * itemsize

    if slab_bytes <= _FUSED_SLAB_BYTES:
        # ---- fused single pass: x read once, written once ----
        cost = pl.CostEstimate(
            flops=int(2 * B * C * HW + 4 * B * C * Cr),
            transcendentals=int(B * C),
            bytes_accessed=int(2 * B * C * HW * itemsize + 2 * C * Cr * 4),
        )
        out = pl.pallas_call(
            functools.partial(_fused_kernel, inv_hw=inv_hw),
            out_shape=jax.ShapeDtypeStruct((B, C, HW), dtype),
            grid_spec=pltpu.PrefetchScalarGridSpec(
                num_scalar_prefetch=0,
                grid=(B,),
                in_specs=[
                    pl.BlockSpec((1, C, HW), lambda i: (i, 0, 0)),
                    pl.BlockSpec((Cr, C), lambda i: (0, 0)),
                    pl.BlockSpec((C, Cr), lambda i: (0, 0)),
                ],
                out_specs=pl.BlockSpec((1, C, HW), lambda i: (i, 0, 0)),
            ),
            compiler_params=pltpu.CompilerParams(
                dimension_semantics=("parallel",),
                vmem_limit_bytes=_VMEM_LIMIT_BYTES),
            cost_estimate=cost,
        )(x, w1, w2)
        return out.reshape(B, C, H, W)

    # ---- fallback: channel-tiled two-pass streaming (huge spatial slabs) ----
    tc = _pick_c_tile(C, HW, itemsize, pack, _TILE_BYTES)
    n_c = pl.cdiv(C, tc)

    pooled = pl.pallas_call(
        functools.partial(_pool_kernel, inv_hw=inv_hw),
        out_shape=jax.ShapeDtypeStruct((B, C, 1), jnp.float32),
        grid_spec=pltpu.PrefetchScalarGridSpec(
            num_scalar_prefetch=0,
            grid=(B, n_c),
            in_specs=[pl.BlockSpec((1, tc, HW), lambda i, j: (i, j, 0))],
            out_specs=pl.BlockSpec((1, tc, 1), lambda i, j: (i, j, 0)),
        ),
        compiler_params=pltpu.CompilerParams(
            dimension_semantics=("parallel", "parallel"),
            vmem_limit_bytes=_VMEM_LIMIT_BYTES),
    )(x)

    # Excitation MLP hoisted out of the streaming kernels: one batched matmul
    # pair + sigmoid over (B, C) is negligible next to the x HBM traffic.
    p = pooled[..., 0]                                              # (B, C) f32
    h = jnp.maximum(p @ w1.astype(jnp.float32).T, 0.0)              # (B, Cr)
    g = 1.0 / (1.0 + jnp.exp(-(h @ w2.astype(jnp.float32).T)))      # (B, C)
    gates = g[..., None]                                            # (B, C, 1)

    out = pl.pallas_call(
        _scale_kernel,
        out_shape=jax.ShapeDtypeStruct((B, C, HW), dtype),
        grid_spec=pltpu.PrefetchScalarGridSpec(
            num_scalar_prefetch=0,
            grid=(B, n_c),
            in_specs=[
                pl.BlockSpec((1, tc, HW), lambda i, j: (i, j, 0)),
                pl.BlockSpec((1, tc, 1), lambda i, j: (i, j, 0)),
            ],
            out_specs=pl.BlockSpec((1, tc, HW), lambda i, j: (i, j, 0)),
        ),
        compiler_params=pltpu.CompilerParams(
            dimension_semantics=("parallel", "parallel"),
            vmem_limit_bytes=_VMEM_LIMIT_BYTES),
    )(x, gates)
    return out.reshape(B, C, H, W)


if __name__ == "__main__":
    # Small but module-consistent shapes: channel=128, reduction=16, spatial 8x8.
    B, C, H, W = 2, 128, 8, 8
    reduction = 16
    hidden = C // reduction

    key = jax.random.PRNGKey(0)
    kx, k1, k2 = jax.random.split(key, 3)

    x = jax.random.normal(kx, (B, C, H, W), dtype=jnp.float32)
    # Deterministic synthetic weights (PyTorch nn.Linear layout: (out, in)).
    w1 = 0.05 * jax.random.normal(k1, (hidden, C), dtype=jnp.float32)  # fc[0].weight
    w2 = 0.05 * jax.random.normal(k2, (C, hidden), dtype=jnp.float32)  # fc[2].weight

    out = jax.block_until_ready(se_attention(x, w1, w2))

    # Pure-JAX reference check of the same semantics.
    pooled = jnp.mean(x, axis=(2, 3))                      # (B, C)
    h = jnp.maximum(pooled @ w1.T, 0.0)                    # (B, hidden)
    y = jax.nn.sigmoid(h @ w2.T)                           # (B, C)
    ref = x * y[:, :, None, None]
    assert out.shape == (B, C, H, W)
    assert jnp.allclose(out, ref, atol=1e-5, rtol=1e-5)

    print("KERNEL_OK")
</pallas_src>

<mosaic_0001>
module attributes {stable_mosaic.version = 11 : i64} {
  func.func @_fused_kernel(%arg0: i32, %arg1: memref<1x128x64xf32, #tpu.memory_space<vmem>>, %arg2: memref<8x128xf32, #tpu.memory_space<vmem>>, %arg3: memref<128x8xf32, #tpu.memory_space<vmem>>, %arg4: memref<1x128x64xf32, #tpu.memory_space<vmem>>) attributes {dimension_semantics = [#tpu.dimension_semantics<parallel>], iteration_bounds = array<i64: 2>, scalar_prefetch = 0 : i64, scratch_operands = 0 : i64, tpu.core_type = #tpu.core_type<tc>, window_params = [{transform_indices = @transform_0, window_bounds = array<i64: 1, 128, 64>}, {pipeline_mode = #tpu.pipeline_mode<synchronous>, transform_indices = @transform_1, window_bounds = array<i64: 8, 128>}, {pipeline_mode = #tpu.pipeline_mode<synchronous>, transform_indices = @transform_2, window_bounds = array<i64: 128, 8>}, {transform_indices = @transform_3, window_bounds = array<i64: 1, 128, 64>}]} {
    %c0 = arith.constant 0 : index
    %c0_0 = arith.constant 0 : index
    %c0_1 = arith.constant 0 : index
    %0 = vector.load %arg1[%c0, %c0_0, %c0_1] : memref<1x128x64xf32, #tpu.memory_space<vmem>>, vector<1x128x64xf32>
    %1 = vector.shape_cast %0 : vector<1x128x64xf32> to vector<128x64xf32>
    %cst = arith.constant dense<0.000000e+00> : vector<128xf32>
    %2 = vector.multi_reduction <add>, %1, %cst [1] : vector<128x64xf32> to vector<128xf32>
    %3 = vector.shape_cast %2 : vector<128xf32> to vector<128x1xf32>
    %cst_2 = arith.constant 1.562500e-02 : f32
    %4 = vector.broadcast %cst_2 : f32 to vector<128x1xf32>
    %5 = arith.mulf %3, %4 : vector<128x1xf32>
    %c0_3 = arith.constant 0 : index
    %c0_4 = arith.constant 0 : index
    %6 = vector.load %arg2[%c0_3, %c0_4] : memref<8x128xf32, #tpu.memory_space<vmem>>, vector<8x128xf32>
    %cst_5 = arith.constant dense<0.000000e+00> : vector<8x1xf32>
    %7 = tpu.matmul %6, %5, %cst_5 {dimension_numbers = #tpu.dot_dimension_numbers<[1], [0], [0], [1], [0, 0, 1, 1], [], []>} : vector<8x128xf32>, vector<128x1xf32>, vector<8x1xf32> -> vector<8x1xf32>
    %cst_6 = arith.constant 0.000000e+00 : f32
    %8 = vector.broadcast %cst_6 : f32 to vector<8x1xf32>
    %9 = arith.maximumf %7, %8 : vector<8x1xf32>
    %c0_7 = arith.constant 0 : index
    %c0_8 = arith.constant 0 : index
    %10 = vector.load %arg3[%c0_7, %c0_8] : memref<128x8xf32, #tpu.memory_space<vmem>>, vector<128x8xf32>
    %cst_9 = arith.constant dense<0.000000e+00> : vector<128x1xf32>
    %11 = tpu.matmul %10, %9, %cst_9 {dimension_numbers = #tpu.dot_dimension_numbers<[1], [0], [0], [1], [0, 0, 1, 1], [], []>} : vector<128x8xf32>, vector<8x1xf32>, vector<128x1xf32> -> vector<128x1xf32>
    %cst_10 = arith.constant 0.000000e+00 : f32
    %12 = vector.broadcast %cst_10 : f32 to vector<128x1xf32>
    %13 = arith.subf %12, %11 : vector<128x1xf32>
    %14 = math.exp %13 : vector<128x1xf32>
    %cst_11 = arith.constant 1.000000e+00 : f32
    %15 = vector.broadcast %cst_11 : f32 to vector<128x1xf32>
    %16 = arith.addf %15, %14 : vector<128x1xf32>
    %cst_12 = arith.constant 1.000000e+00 : f32
    %17 = vector.broadcast %cst_12 : f32 to vector<128x1xf32>
    %18 = arith.divf %17, %16 : vector<128x1xf32>
    %c0_13 = arith.constant 0 : index
    %c0_14 = arith.constant 0 : index
    %c0_15 = arith.constant 0 : index
    %19 = vector.load %arg1[%c0_13, %c0_14, %c0_15] : memref<1x128x64xf32, #tpu.memory_space<vmem>>, vector<1x128x64xf32>
    %20 = vector.shape_cast %19 : vector<1x128x64xf32> to vector<128x64xf32>
    %21 = vector.broadcast %18 : vector<128x1xf32> to vector<128x64xf32>
    %22 = arith.mulf %20, %21 : vector<128x64xf32>
    %c0_16 = arith.constant 0 : index
    %c0_17 = arith.constant 0 : index
    %c0_18 = arith.constant 0 : index
    %23 = vector.load %arg4[%c0_16, %c0_17, %c0_18] : memref<1x128x64xf32, #tpu.memory_space<vmem>>, vector<1x128x64xf32>
    %24 = vector.shape_cast %23 : vector<1x128x64xf32> to vector<128x64xf32>
    %25 = vector.shape_cast %22 : vector<128x64xf32> to vector<1x128x64xf32>
    tpu.vector_store %arg4[%c0_16, %c0_17, %c0_18], %25 {strides = array<i32>} : memref<1x128x64xf32, #tpu.memory_space<vmem>>, vector<1x128x64xf32>,
    return
  }
  func.func @transform_0(%arg0: i32) -> (i32, i32, i32) {
    %c0_i32 = arith.constant 0 : i32
    %c0_i32_0 = arith.constant 0 : i32
    %c0_i32_1 = arith.constant 0 : i32
    return %arg0, %c0_i32, %c0_i32_0 : i32, i32, i32
  }
  func.func @transform_1(%arg0: i32) -> (i32, i32) {
    %c0_i32 = arith.constant 0 : i32
    %c0_i32_0 = arith.constant 0 : i32
    %c0_i32_1 = arith.constant 0 : i32
    return %c0_i32, %c0_i32_0 : i32, i32
  }
  func.func @transform_2(%arg0: i32) -> (i32, i32) {
    %c0_i32 = arith.constant 0 : i32
    %c0_i32_0 = arith.constant 0 : i32
    %c0_i32_1 = arith.constant 0 : i32
    return %c0_i32, %c0_i32_0 : i32, i32
  }
  func.func @transform_3(%arg0: i32) -> (i32, i32, i32) {
    %c0_i32 = arith.constant 0 : i32
    %c0_i32_0 = arith.constant 0 : i32
    %c0_i32_1 = arith.constant 0 : i32
    return %arg0, %c0_i32, %c0_i32_0 : i32, i32, i32
  }
}

</mosaic_0001>

<bundles_post_ra>
// kernel: tpu_custom_call.1
= control target key start
LH: loop header
LB: loop body
LE: loop exit
PB: predicated region body
PF: predicated region fallthrough
CT: control target
= control target key end

     0   :  { %s1055_s12 = smov 0   ;;  %s1286_s0 = inlined_call_operand.vmem [shape: f32[2,128,64], index: 0, kind: input, shape index: {}]   ;;  %s1287_s1 = inlined_call_operand.vmem [shape: f32[8,128], index: 1, kind: input, shape index: {}]   ;;  %s1288_s2 = inlined_call_operand.vmem [shape: f32[128,8], index: 2, kind: input, shape index: {}]   ;;  %s1289_s3 = inlined_call_operand.vmem [shape: f32[2,128,64], index: 3, kind: output, shape index: {}]  }
   0x1 LB: > { %s797_s13 = sadd.s32 4294967295, %s1029_s12   ;;  %p801_p0 = scmp.ge.s32.totalorder %s1029_s12, 1  ;;  %s1029_s12 = sphi %s1055_s12, %s13_s12  }
   0x2   : > { %p137_p1 = scmp.lt.s32.totalorder %s1029_s12, 3 }
   0x4   : > { %p138_p2 = pnand %p801_p0, %p137_p1 }
   0x5   : > { %p161_p3 = scmp.lt.s32.totalorder (!%p138_p2), %s797_s13, 1  ;;  %vm187_vm0 = vcmask (!%p138_p2), 523264   ;;  %v1031_v28 = vmov (!%p138_p2), 0.0|0.0   ;;  %vm1032_vm1 = vmmov (!%p138_p2), 0   ;;  %v1033_v33 = vmov (!%p138_p2), 0.0  }
   0x6   : > { %141 = sbr.rel (%p138_p2) target bundleno = 826 (0x33a), region = 32  ;;  %921 = vmatprep.subr.bf16.mxu0 (!%p138_p2), %v1031_v28  ;;  %892 = vmatprep.mubr.msk.f32.mxu0 (!%p138_p2), %vm1032_vm1, %v1033_v33  ;;  %vm340_vm2 = vcmask (!%p138_p2), 64512   ;;  %v327_v33 = vld [vmem:[%s1288_s2 + $0x18] sm:$0xff] (!%p138_p2) }
   0xd   : > { %s1291_s13 = smov (!%p161_p3, %s797_s13), 1 }
   0xe   : > { %s824_s14 = sshll.u32 %s1291_s13, 7 }
   0xf   : > { %s1071_s17 = scalar_lea.vmem %s1286_s0, %s824_s14  ;;  %s1233_s30 = scalar_lea.vmem %s1289_s3, %s824_s14 }
  0x10   : > { %v1074_v0 = vld [vmem:[%s1071_s17 + $0x10] sm:$0xff]  ;;  %v1077_v1 = vld [vmem:[%s1071_s17] sm:$0xff]  ;;  %v1080_v2 = vld [vmem:[%s1071_s17 + $0x18] sm:$0xff] }
  0x11   : > { %v194_v3 = vsel %vm187_vm0, %v1074_v0, 0.0  ;;  %v188_v4 = vsel %vm187_vm0, %v1077_v1, 0.0  ;;  %v1087_v5 = vld [vmem:[%s1071_s17 + $0x8] sm:$0xff]  ;;  %v197_v6 = vsel %vm187_vm0, %v1080_v2, 0.0  ;;  %v1097_v9 = vld [vmem:[%s1071_s17 + $0x20] sm:$0xff]  ;;  %v1104_v12 = vld [vmem:[%s1071_s17 + $0x38] sm:$0xff] }
  0x12   : > { %195 = vadd.xlane.f32.xlu1 %v194_v3  ;;  %189 = vadd.xlane.f32.xlu0 %v188_v4  ;;  %v191_v7 = vsel %vm187_vm0, %v1087_v5, 0.0  ;;  %v1094_v8 = vld [vmem:[%s1071_s17 + $0x28] sm:$0xff]  ;;  %v200_v11 = vsel %vm187_vm0, %v1097_v9, 0.0  ;;  %v1107_v13 = vld [vmem:[%s1071_s17 + $0x30] sm:$0xff]  ;;  %v209_v14 = vsel %vm187_vm0, %v1104_v12, 0.0  ;;  %v1117_v17 = vld [vmem:[%s1071_s17 + $0x40] sm:$0xff] }
  0x13   : > { %v203_v10 = vsel %vm187_vm0, %v1094_v8, 0.0  ;;  %v206_v15 = vsel %vm187_vm0, %v1107_v13, 0.0  ;;  %v1114_v16 = vld [vmem:[%s1071_s17 + $0x48] sm:$0xff]  ;;  %v212_v19 = vsel %vm187_vm0, %v1117_v17, 0.0  ;;  %v1124_v20 = vld [vmem:[%s1071_s17 + $0x58] sm:$0xff]  ;;  %v1127_v21 = vld [vmem:[%s1071_s17 + $0x50] sm:$0xff] }
  0x14   : > { %v215_v18 = vsel %vm187_vm0, %v1114_v16, 0.0  ;;  %v221_v22 = vsel %vm187_vm0, %v1124_v20, 0.0  ;;  %v218_v23 = vsel %vm187_vm0, %v1127_v21, 0.0  ;;  %v1134_v24 = vld [vmem:[%s1071_s17 + $0x68] sm:$0xff]  ;;  %v1137_v25 = vld [vmem:[%s1071_s17 + $0x60] sm:$0xff]  ;;  %v1145_v29 = vld [vmem:[%s1071_s17 + $0x78] sm:$0xff] }
  0x15   : > { %v227_v26 = vsel %vm187_vm0, %v1134_v24, 0.0  ;;  %v224_v27 = vsel %vm187_vm0, %v1137_v25, 0.0  ;;  %v1148_v30 = vld [vmem:[%s1071_s17 + $0x70] sm:$0xff]  ;;  %v233_v31 = vsel %vm187_vm0, %v1145_v29, 0.0 }
  0x16   : > { %198 = vadd.xlane.f32.xlu1 %v197_v6  ;;  %192 = vadd.xlane.f32.xlu0 %v191_v7  ;;  %v230_v32 = vsel %vm187_vm0, %v1148_v30, 0.0 }
  0x1a   : > { %204 = vadd.xlane.f32.xlu1 %v203_v10  ;;  %201 = vadd.xlane.f32.xlu0 %v200_v11 }
  0x1e   : > { %210 = vadd.xlane.f32.xlu1 %v209_v14  ;;  %207 = vadd.xlane.f32.xlu0 %v206_v15 }
  0x22   : > { %216 = vadd.xlane.f32.xlu1 %v215_v18  ;;  %213 = vadd.xlane.f32.xlu0 %v212_v19 }
  0x26   : > { %222 = vadd.xlane.f32.xlu1 %v221_v22  ;;  %219 = vadd.xlane.f32.xlu0 %v218_v23  ;;  %v252_v22 = vld [vmem:[%s1287_s1] sm:$0xff] }
  0x27   : > { %v324_v23 = vld [vmem:[%s1288_s2] sm:$0xff] }
  0x28   : > { %897 = vmatprep.mubr.msk.f32.mxu1 %vm340_vm2, %v324_v23 }
  0x2a   : > { %228 = vadd.xlane.f32.xlu1 %v227_v26  ;;  %225 = vadd.xlane.f32.xlu0 %v224_v27 }
  0x2e   : > { %234 = vadd.xlane.f32.xlu1 %v233_v31  ;;  %231 = vadd.xlane.f32.xlu0 %v230_v32  ;;  %v326_v32 = vld [vmem:[%s1288_s2 + $0x10] sm:$0xff] }
  0x9f   : > { %v196_v34 = vpop.xlane.xlu1 %195  ;;  %v190_v35 = vpop.xlane.xlu0 %189 }
  0xa0   : > { %v236_v38 = vmul.f32 0.015625, %v190_v35  ;;  %v238_v40 = vmul.f32 0.015625, %v196_v34  ;;  %v328_v34 = vld [vmem:[%s1288_s2 + $0x20] sm:$0xff]  ;;  %v329_v35 = vld [vmem:[%s1288_s2 + $0x28] sm:$0xff] }
  0xa3   : > { %v199_v36 = vpop.xlane.xlu1 %198  ;;  %v193_v37 = vpop.xlane.xlu0 %192 }
  0xa4   : > { %v237_v39 = vmul.f32 0.015625, %v193_v37  ;;  %v239_v41 = vmul.f32 0.015625, %v199_v36  ;;  %v330_v36 = vld [vmem:[%s1288_s2 + $0x30] sm:$0xff]  ;;  %v331_v37 = vld [vmem:[%s1288_s2 + $0x38] sm:$0xff] }
  0xa6   : > { %v922_v42 = vpack.c.bf16 %v237_v39, %v236_v38  ;;  %v925_v47 = vpack.c.bf16 %v239_v41, %v238_v40  ;;  %v332_v38 = vld [vmem:[%s1288_s2 + $0x40] sm:$0xff]  ;;  %v333_v39 = vld [vmem:[%s1288_s2 + $0x48] sm:$0xff]  ;;  %v334_v40 = vld [vmem:[%s1288_s2 + $0x50] sm:$0xff] }
  0xa7   : > { %v205_v43 = vpop.xlane.xlu1 %204  ;;  %v202_v44 = vpop.xlane.xlu0 %201  ;;  %v335_v41 = vld [vmem:[%s1288_s2 + $0x58] sm:$0xff] }
  0xa8   : > { %923 = vmatpush3.bf16.msra.mxu0 %v922_v42  ;;  %v241_v45 = vmul.f32 0.015625, %v205_v43  ;;  %v240_v46 = vmul.f32 0.015625, %v202_v44  ;;  %v336_v42 = vld [vmem:[%s1288_s2 + $0x60] sm:$0xff]  ;;  %v337_v43 = vld [vmem:[%s1288_s2 + $0x68] sm:$0xff]  ;;  %v338_v44 = vld [vmem:[%s1288_s2 + $0x70] sm:$0xff] }
  0xa9   : > { %924 = vmatprep.subr.bf16.mxu0 %v1031_v28 }
  0xaa   : > { %v928_v50 = vpack.c.bf16 %v241_v45, %v240_v46  ;;  %v339_v45 = vld [vmem:[%s1288_s2 + $0x78] sm:$0xff]  ;;  %v1034_v46 = vmov 0  }
  0xab   : > { %v211_v48 = vpop.xlane.xlu1 %210  ;;  %v208_v49 = vpop.xlane.xlu0 %207  ;;  %957 = vset.pattern.permute.xlu1 %v1034_v46  ;;  %958 = vset.pattern.permute.xlu0 %v1034_v46 }
  0xac   : > { %926 = vmatpush3.bf16.msra.mxu0 %v925_v47  ;;  %v243_v51 = vmul.f32 0.015625, %v211_v48  ;;  %v242_v52 = vmul.f32 0.015625, %v208_v49 }
  0xad   : > { %927 = vmatprep.subr.bf16.mxu0 %v1031_v28 }
  0xae   : > { %v931_v55 = vpack.c.bf16 %v243_v51, %v242_v52 }
  0xaf   : > { %v217_v53 = vpop.xlane.xlu1 %216  ;;  %v214_v54 = vpop.xlane.xlu0 %213 }
  0xb0   : > { %929 = vmatpush3.bf16.msra.mxu0 %v928_v50  ;;  %v245_v56 = vmul.f32 0.015625, %v217_v53  ;;  %v244_v57 = vmul.f32 0.015625, %v214_v54 }
  0xb1   : > { %930 = vmatprep.subr.bf16.mxu0 %v1031_v28 }
  0xb2   : > { %v934_v60 = vpack.c.bf16 %v245_v56, %v244_v57 }
  0xb3   : > { %v223_v58 = vpop.xlane.xlu1 %222  ;;  %v220_v59 = vpop.xlane.xlu0 %219 }
  0xb4   : > { %932 = vmatpush3.bf16.msra.mxu0 %v931_v55  ;;  %v247_v61 = vmul.f32 0.015625, %v223_v58  ;;  %v246_v62 = vmul.f32 0.015625, %v220_v59 }
  0xb5   : > { %933 = vmatprep.subr.bf16.mxu0 %v1031_v28 }
  0xb6   : > { %v937_v4 = vpack.c.bf16 %v247_v61, %v246_v62 }
  0xb7   : > { %v229_v63 = vpop.xlane.xlu1 %228  ;;  %v226_v3 = vpop.xlane.xlu0 %225 }
  0xb8   : > { %935 = vmatpush3.bf16.msra.mxu0 %v934_v60  ;;  %v249_v6 = vmul.f32 0.015625, %v229_v63  ;;  %v248_v7 = vmul.f32 0.015625, %v226_v3 }
  0xb9   : > { %936 = vmatprep.subr.bf16.mxu0 %v1031_v28 }
  0xba   : > { %v940_v14 = vpack.c.bf16 %v249_v6, %v248_v7 }
  0xbb   : > { %v235_v10 = vpop.xlane.xlu1 %234  ;;  %v232_v11 = vpop.xlane.xlu0 %231 }
  0xbc   : > { %938 = vmatpush3.bf16.msra.mxu0 %v937_v4  ;;  %v251_v15 = vmul.f32 0.015625, %v235_v10  ;;  %v250_v18 = vmul.f32 0.015625, %v232_v11 }
  0xbd   : > { %939 = vmatprep.subr.bf16.mxu0 %v1031_v28 }
  0xbe   : > { %v943_v19 = vpack.c.bf16 %v251_v15, %v250_v18 }
  0xc0   : > { %941 = vmatpush3.bf16.msra.mxu0 %v940_v14 }
  0xc1   : > { %942 = vmatprep.subr.bf16.mxu0 %v1031_v28  ;;  %v325_v28 = vld [vmem:[%s1288_s2 + $0x8] sm:$0xff] }
  0xc4   : > { %944 = vmatpush3.bf16.msra.mxu0 %v943_v19 }
  0xc7   : > { %893 = vmatmul.mubr.f32.vlgmr.msra.gmra.mrb[0].mxu0 %v252_v22 }
 0x19a   : > { %v319_v26 = vpop.f32.mrb[0].mxu0 }
 0x19b   : > { %v323_v27 = vmax.f32 %v319_v26, 0.0  ;;  %v894_v31 = vpop.f32.mrb[1].mxu0 }
 0x19d   : > { %895 = vmatprep.subr.mxu1 %v323_v27 }
 0x19e   : > { %896 = vmatpush3.msra.mxu1 %v323_v27 }
 0x19f   : > { %898 = vmatmul.mubr.msk.f32.vlgmr.msra.gmra.mrb[0].mxu1 %vm340_vm2, %v325_v28 }
 0x1a0   : > { %900 = vmatprep.mubr.msk.f32.mxu1 %vm340_vm2, %v326_v32 }
 0x1a3   : > { %901 = vmatmul.mubr.msk.f32.gmra.mrb[2].mxu1 %vm340_vm2, %v327_v33 }
 0x1a4   : > { %903 = vmatprep.mubr.msk.f32.mxu1 %vm340_vm2, %v328_v34 }
 0x1a7   : > { %904 = vmatmul.mubr.msk.f32.gmra.mrb[4].mxu1 %vm340_vm2, %v329_v35 }
 0x1a8   : > { %906 = vmatprep.mubr.msk.f32.mxu1 %vm340_vm2, %v330_v36 }
 0x1ab   : > { %907 = vmatmul.mubr.msk.f32.gmra.mrb[6].mxu1 %vm340_vm2, %v331_v37 }
 0x1ac   : > { %909 = vmatprep.mubr.msk.f32.mxu1 %vm340_vm2, %v332_v38 }
 0x1af   : > { %910 = vmatmul.mubr.msk.f32.gmra.mrb[8].mxu1 %vm340_vm2, %v333_v39 }
 0x1b0   : > { %912 = vmatprep.mubr.msk.f32.mxu1 %vm340_vm2, %v334_v40 }
 0x1b3   : > { %913 = vmatmul.mubr.msk.f32.gmra.mrb[10].mxu1 %vm340_vm2, %v335_v41 }
 0x1b4   : > { %915 = vmatprep.mubr.msk.f32.mxu1 %vm340_vm2, %v336_v42 }
 0x1b7   : > { %916 = vmatmul.mubr.msk.f32.gmra.mrb[12].mxu1 %vm340_vm2, %v337_v43 }
 0x1b8   : > { %918 = vmatprep.mubr.msk.f32.mxu1 %vm340_vm2, %v338_v44 }
 0x1bb   : > { %919 = vmatmul.mubr.msk.f32.gmra.mrb[14].mxu1 %vm340_vm2, %v339_v45 }
 0x272   : > { %v899_v47 = vpop.f32.mrb[0].mxu1 }
 0x273   : > { %v535_v48 = vsub.f32 0.0, %v899_v47  ;;  %v455_v49 = vpop.f32.mrb[1].mxu1 }
 0x274   : > { %v534_v50 = vsub.f32 0.0, %v455_v49 }
 0x275   : > { %v552_v51 = vmul.f32 1.442695, %v535_v48 }
 0x276   : > { %v550_v52 = vmul.f32 1.442695, %v534_v50  ;;  %v902_v53 = vpop.f32.mrb[2].mxu1 }
 0x277   : > { %959 = vpow2.f32 %v552_v51  ;;  %v537_v54 = vsub.f32 0.0, %v902_v53  ;;  %v465_v55 = vpop.f32.mrb[3].mxu1 }
 0x278   : > { %961 = vpow2.f32 %v550_v52  ;;  %v536_v56 = vsub.f32 0.0, %v465_v55 }
 0x279   : > { %v556_v57 = vmul.f32 1.442695, %v537_v54 }
 0x27a   : > { %v554_v58 = vmul.f32 1.442695, %v536_v56  ;;  %v905_v59 = vpop.f32.mrb[4].mxu1 }
 0x27b   : > { %963 = vpow2.f32 %v556_v57  ;;  %v539_v60 = vsub.f32 0.0, %v905_v59  ;;  %v475_v61 = vpop.f32.mrb[5].mxu1 }
 0x27c   : > { %965 = vpow2.f32 %v554_v58  ;;  %v538_v62 = vsub.f32 0.0, %v475_v61 }
 0x27d   : > { %v560_v63 = vmul.f32 1.442695, %v539_v60 }
 0x27e   : > { %v558_v3 = vmul.f32 1.442695, %v538_v62  ;;  %v908_v4 = vpop.f32.mrb[6].mxu1 }
 0x27f   : > { %967 = vpow2.f32 %v560_v63  ;;  %v541_v6 = vsub.f32 0.0, %v908_v4  ;;  %v485_v7 = vpop.f32.mrb[7].mxu1 }
 0x280   : > { %969 = vpow2.f32 %v558_v3  ;;  %v540_v18 = vsub.f32 0.0, %v485_v7 }
 0x281   : > { %v960_v10 = vpop.eup %959  ;;  %v564_v11 = vmul.f32 1.442695, %v541_v6 }
 0x282   : > { %v962_v14 = vpop.eup %961  ;;  %v583_v15 = vadd.f32 1.0, %v960_v10  ;;  %v911_v19 = vpop.f32.mrb[8].mxu1  ;;  %v562_v34 = vmul.f32 1.442695, %v540_v18 }
 0x283   : > { %v582_v22 = vadd.f32 1.0, %v962_v14  ;;  %971 = vpow2.f32 %v564_v11  ;;  %v543_v23 = vsub.f32 0.0, %v911_v19  ;;  %v495_v26 = vpop.f32.mrb[9].mxu1 }
 0x284   : > { %973 = vrcp.f32 %v583_v15  ;;  %v542_v28 = vsub.f32 0.0, %v495_v26 }
 0x285   : > { %v964_v27 = vpop.eup %963  ;;  %975 = vrcp.f32 %v582_v22  ;;  %v568_v31 = vmul.f32 1.442695, %v543_v23 }
 0x286   : > { %v966_v32 = vpop.eup %965  ;;  %v585_v33 = vadd.f32 1.0, %v964_v27  ;;  %v914_v35 = vpop.f32.mrb[10].mxu1  ;;  %v566_v41 = vmul.f32 1.442695, %v542_v28 }
 0x287   : > { %977 = vpow2.f32 %v568_v31  ;;  %v545_v36 = vsub.f32 0.0, %v914_v35  ;;  %v505_v37 = vpop.f32.mrb[11].mxu1  ;;  %v584_v38 = vadd.f32 1.0, %v966_v32 }
 0x288   : > { %979 = vrcp.f32 %v585_v33  ;;  %v544_v39 = vsub.f32 0.0, %v505_v37 }
 0x289   : > { %v968_v40 = vpop.eup %967  ;;  %v572_v42 = vmul.f32 1.442695, %v545_v36  ;;  %981 = vpow2.f32 %v562_v34 }
 0x28a   : > { %v587_v43 = vadd.f32 1.0, %v968_v40  ;;  %v917_v44 = vpop.f32.mrb[12].mxu1  ;;  %v970_v45 = vpop.eup %969  ;;  %v570_v48 = vmul.f32 1.442695, %v544_v39 }
 0x28b   : > { %983 = vpow2.f32 %v572_v42  ;;  %v547_v46 = vsub.f32 0.0, %v917_v44  ;;  %v515_v47 = vpop.f32.mrb[13].mxu1  ;;  %v586_v53 = vadd.f32 1.0, %v970_v45 }
 0x28c   : > { %985 = vrcp.f32 %v584_v38  ;;  %v546_v49 = vsub.f32 0.0, %v515_v47 }
 0x28d   : > { %v972_v50 = vpop.eup %971  ;;  %987 = vpow2.f32 %v566_v41  ;;  %v576_v51 = vmul.f32 1.442695, %v547_v46 }
 0x28e   : > { %v974_v52 = vpop.eup %973  ;;  %989 = vrcp.f32 %v587_v43  ;;  %v920_v54 = vpop.f32.mrb[14].mxu1  ;;  %v574_v56 = vmul.f32 1.442695, %v546_v49  ;;  %v589_v63 = vadd.f32 1.0, %v972_v50 }
 0x28f   : > { %v976_v55 = vpop.eup %975  ;;  %991 = vpow2.f32 %v576_v51  ;;  %v549_v57 = vsub.f32 0.0, %v920_v54  ;;  %637 = vperm.xlu1 %957, %v974_v52   ;;  %v525_v58 = vpop.f32.mrb[15].mxu1 }
 0x290   : > { %993 = vpow2.f32 %v570_v48  ;;  %632 = vperm.xlu0 %958, %v976_v55   ;;  %v548_v61 = vsub.f32 0.0, %v525_v58 }
 0x291   : > { %v978_v59 = vpop.eup %977  ;;  %v580_v60 = vmul.f32 1.442695, %v549_v57  ;;  %995 = vrcp.f32 %v586_v53 }
 0x292   : > { %v980_v62 = vpop.eup %979  ;;  %v591_v3 = vadd.f32 1.0, %v978_v59  ;;  %997 = vpow2.f32 %v574_v56  ;;  %v578_v7 = vmul.f32 1.442695, %v548_v61 }
 0x293   : > { %647 = vperm.xlu1 %957, %v980_v62   ;;  %v982_v4 = vpop.eup %981 }
 0x294   : > { %999 = vrcp.f32 %v591_v3  ;;  %v588_v15 = vadd.f32 1.0, %v982_v4 }
 0x295   : > { %v984_v6 = vpop.eup %983  ;;  %1001 = vpow2.f32 %v580_v60 }
 0x296   : > { %v986_v10 = vpop.eup %985  ;;  %1003 = vrcp.f32 %v589_v63  ;;  %v593_v11 = vadd.f32 1.0, %v984_v6 }
 0x297   : > { %v988_v14 = vpop.eup %987  ;;  %642 = vperm.xlu1 %957, %v986_v10  }
 0x298   : > { %v990_v18 = vpop.eup %989  ;;  %1005 = vrcp.f32 %v593_v11  ;;  %v590_v23 = vadd.f32 1.0, %v988_v14 }
 0x299   : > { %v992_v19 = vpop.eup %991  ;;  %1007 = vpow2.f32 %v578_v7 }
 0x29a   : > { %v994_v22 = vpop.eup %993  ;;  %v595_v26 = vadd.f32 1.0, %v992_v19  ;;  %1009 = vrcp.f32 %v588_v15 }
 0x29b   : > { %657 = vperm.xlu1 %957, %v990_v18   ;;  %v996_v27 = vpop.eup %995  ;;  %v592_v28 = vadd.f32 1.0, %v994_v22 }
 0x29c   : > { %1011 = vrcp.f32 %v595_v26  ;;  %v998_v31 = vpop.eup %997 }
 0x29d   : > { %1013 = vrcp.f32 %v590_v23  ;;  %v594_v37 = vadd.f32 1.0, %v998_v31 }
 0x29e   : > { %v1000_v32 = vpop.eup %999  ;;  %1015 = vrcp.f32 %v592_v28 }
 0x29f   : > { %v1002_v33 = vpop.eup %1001  ;;  %652 = vperm.xlu1 %957, %v996_v27   ;;  %677 = vperm.xlu0 %958, %v1000_v32  }
 0x2a0   : > { %v1004_v34 = vpop.eup %1003  ;;  %v597_v35 = vadd.f32 1.0, %v1002_v33 }
 0x2a2   : > { %v1006_v36 = vpop.eup %1005  ;;  %1017 = vrcp.f32 %v597_v35 }
 0x2a3   : > { %v1008_v38 = vpop.eup %1007  ;;  %667 = vperm.xlu1 %957, %v1004_v34   ;;  %687 = vperm.xlu0 %958, %v1006_v36   ;;  %1019 = vrcp.f32 %v594_v37 }
 0x2a4   : > { %v1010_v39 = vpop.eup %1009  ;;  %v596_v41 = vadd.f32 1.0, %v1008_v38 }
 0x2a6   : > { %v1012_v40 = vpop.eup %1011  ;;  %1021 = vrcp.f32 %v596_v41 }
 0x2a7   : > { %662 = vperm.xlu1 %957, %v1010_v39   ;;  %697 = vperm.xlu0 %958, %v1012_v40   ;;  %v1014_v42 = vpop.eup %1013 }
 0x2a8   : > { %v1016_v43 = vpop.eup %1015 }
 0x2ab   : > { %672 = vperm.xlu1 %957, %v1014_v42  }
 0x2ac   : > { %v1018_v44 = vpop.eup %1017 }
 0x2ad   : > { %707 = vperm.xlu0 %958, %v1018_v44   ;;  %v1020_v45 = vpop.eup %1019 }
 0x2af   : > { %682 = vperm.xlu1 %957, %v1016_v43  }
 0x2b0   : > { %v1022_v46 = vpop.eup %1021 }
 0x2b3   : > { %692 = vperm.xlu1 %957, %v1020_v45  }
 0x2b7   : > { %702 = vperm.xlu1 %957, %v1022_v46  }
 0x30e   : > { %v638_v47 = vpop.permute.xlu1 %637 }
 0x30f   : > { %v711_v48 = vmul.f32 %v638_v47, %v1087_v5  ;;  %v633_v49 = vpop.permute.xlu0 %632 }
 0x310   : > { %v710_v50 = vmul.f32 %v633_v49, %v1077_v1 }
 0x311   : > { %727 = vst.msk [vmem:[%s1233_s30 + $0x8] sm:$0xff] %vm187_vm0, %v711_v48 }
 0x312   : > { %726 = vst.msk [vmem:[%s1233_s30] sm:$0xff] %vm187_vm0, %v710_v50  ;;  %v648_v51 = vpop.permute.xlu1 %647 }
 0x313   : > { %v713_v52 = vmul.f32 %v648_v51, %v1080_v2 }
 0x315   : > { %729 = vst.msk [vmem:[%s1233_s30 + $0x18] sm:$0xff] %vm187_vm0, %v713_v52 }
 0x316   : > { %v643_v53 = vpop.permute.xlu1 %642 }
 0x317   : > { %v712_v54 = vmul.f32 %v643_v53, %v1074_v0 }
 0x319   : > { %728 = vst.msk [vmem:[%s1233_s30 + $0x10] sm:$0xff] %vm187_vm0, %v712_v54 }
 0x31a   : > { %v658_v5 = vpop.permute.xlu1 %657 }
 0x31b   : > { %v715_v1 = vmul.f32 %v658_v5, %v1094_v8 }
 0x31d   : > { %731 = vst.msk [vmem:[%s1233_s30 + $0x28] sm:$0xff] %vm187_vm0, %v715_v1 }
 0x31e   : > { %v653_v55 = vpop.permute.xlu1 %652  ;;  %v678_v56 = vpop.permute.xlu0 %677 }
 0x31f   : > { %v714_v2 = vmul.f32 %v653_v55, %v1097_v9  ;;  %v719_v57 = vmul.f32 %v678_v56, %v1114_v16 }
 0x321   : > { %730 = vst.msk [vmem:[%s1233_s30 + $0x20] sm:$0xff] %vm187_vm0, %v714_v2  ;;  %735 = vst.msk [vmem:[%s1233_s30 + $0x48] sm:$0xff] %vm187_vm0, %v719_v57 }
 0x322   : > { %v668_v0 = vpop.permute.xlu1 %667  ;;  %v688_v58 = vpop.permute.xlu0 %687 }
 0x323   : > { %v717_v59 = vmul.f32 %v668_v0, %v1104_v12  ;;  %v721_v8 = vmul.f32 %v688_v58, %v1124_v20 }
 0x325   : > { %733 = vst.msk [vmem:[%s1233_s30 + $0x38] sm:$0xff] %vm187_vm0, %v717_v59  ;;  %737 = vst.msk [vmem:[%s1233_s30 + $0x58] sm:$0xff] %vm187_vm0, %v721_v8 }
 0x326   : > { %v663_v9 = vpop.permute.xlu1 %662  ;;  %v698_v60 = vpop.permute.xlu0 %697 }
 0x327   : > { %v716_v16 = vmul.f32 %v663_v9, %v1107_v13  ;;  %v723_v61 = vmul.f32 %v698_v60, %v1134_v24 }
 0x329   : > { %732 = vst.msk [vmem:[%s1233_s30 + $0x30] sm:$0xff] %vm187_vm0, %v716_v16  ;;  %739 = vst.msk [vmem:[%s1233_s30 + $0x68] sm:$0xff] %vm187_vm0, %v723_v61 }
 0x32a   : > { %v673_v12 = vpop.permute.xlu1 %672 }
 0x32b   : > { %v718_v20 = vmul.f32 %v673_v12, %v1117_v17 }
 0x32c   : > { %v708_v62 = vpop.permute.xlu0 %707 }
 0x32d   : > { %734 = vst.msk [vmem:[%s1233_s30 + $0x40] sm:$0xff] %vm187_vm0, %v718_v20  ;;  %v725_v63 = vmul.f32 %v708_v62, %v1145_v29 }
 0x32e   : > { %v683_v3 = vpop.permute.xlu1 %682 }
 0x32f   : > { %741 = vst.msk [vmem:[%s1233_s30 + $0x78] sm:$0xff] %vm187_vm0, %v725_v63  ;;  %v720_v13 = vmul.f32 %v683_v3, %v1127_v21 }
 0x331   : > { %736 = vst.msk [vmem:[%s1233_s30 + $0x50] sm:$0xff] %vm187_vm0, %v720_v13 }
 0x332   : > { %v693_v24 = vpop.permute.xlu1 %692 }
 0x333   : > { %v722_v4 = vmul.f32 %v693_v24, %v1137_v25 }
 0x335   : > { %738 = vst.msk [vmem:[%s1233_s30 + $0x60] sm:$0xff] %vm187_vm0, %v722_v4 }
 0x336   : > { %v703_v6 = vpop.permute.xlu1 %702 }
 0x337   : > { %v724_v17 = vmul.f32 %v703_v6, %v1148_v30 }
 0x339   : > { %740 = vst.msk [vmem:[%s1233_s30 + $0x70] sm:$0xff] %vm187_vm0, %v724_v17 }
 0x33a PF: > { %s13_s12 = sadd.s32 1, %s1029_s12  }
 0x33b   : > { %p10_p4 = scmp.ge.s32.totalorder %s13_s12, 4  }
 0x33d   :  { %12 = sbr.rel (!%p10_p4) target bundleno = 1 (0x1), region = 62 }

</bundles_post_ra>
